<compile_context>
chip_gen: v7x
topology: tpu7x:2x2x1
jax: 0.10.0
libtpu: 0.0.40
codegen_flags: <defaults>
</compile_context>

<pallas_src>
import functools

import jax
import jax.numpy as jnp
from jax.experimental import pallas as pl
from jax.experimental.pallas import tpu as pltpu


def _round_up(x: int, m: int) -> int:
    return ((x + m - 1) // m) * m


def _pad2d(arr, rows: int, cols: int):
    """Zero-pad a 2-D array up to (rows, cols); no-op (no copy) if aligned."""
    p0 = rows - arr.shape[0]
    p1 = cols - arr.shape[1]
    if p0 == 0 and p1 == 0:
        return arr
    return jnp.pad(arr, ((0, p0), (0, p1)))


def _peft_linear_kernel(x_ref, xa_ref, b_ref, w_ref, bias_ref, o_ref, acc_ref):
    """One (i, j, k) grid step of  o = (x @ a) @ b + x @ w + bias.

    x_ref   : (tm, tk)    tile of x
    xa_ref  : (tm, r)     precomputed x @ a row-block (f32, hoisted to wrapper)
    b_ref   : (r,  tn)    N-slice of the low-rank `b` factor
    w_ref   : (tk, tn)    tile of the frozen base weight
    bias_ref: (1,  tn)    N-slice of the bias (zeros if no bias)
    o_ref   : (tm, tn)    output tile (written once, at the last k step)
    acc_ref : (tm, tn)    f32 accumulator for x @ w
    """
    k = pl.program_id(2)

    @pl.when(k == 0)
    def _():
        acc_ref[...] = jnp.zeros_like(acc_ref)

    # Base path partial product (dominant MXU / HBM work).
    acc_ref[...] += jnp.dot(x_ref[...], w_ref[...],
                            preferred_element_type=jnp.float32)

    @pl.when(k == pl.num_programs(2) - 1)
    def _():
        adapter = jnp.dot(
            xa_ref[...].astype(jnp.float32),
            b_ref[...].astype(jnp.float32),
            preferred_element_type=jnp.float32,
        )
        out = acc_ref[...] + adapter + bias_ref[...].astype(jnp.float32)
        o_ref[...] = out.astype(o_ref.dtype)


def peft_linear_forward(x, a, b, w, bias=None, *, use_scale=False, alpha=32.0,
                        compute_dtype=None,
                        tm_max=512, tn_max=1024, tk_max=1024,
                        vmem_limit_bytes=48 << 20):
    """Pallas implementation of PeftLinearDebug.forward (unmerged path).

    x: [..., in_features]  ->  [..., out_features]
    compute_dtype: optional dtype (e.g. jnp.bfloat16) for the dominant x / w
      streams; accumulation stays f32 and the output keeps x's dtype.
    """
    in_features, rank = a.shape
    rank_b, out_features = b.shape
    assert rank_b == rank
    assert w.shape == (in_features, out_features)
    assert x.shape[-1] == in_features

    out_dtype = x.dtype
    lead_shape = x.shape[:-1]
    m = 1
    for d in lead_shape:
        m *= d
    x2d = x.reshape(m, in_features)

    # use_scale: the module scales `a` by alpha/rank before the product.
    a_eff = (alpha / rank) * a if use_scale else a

    # Hoisted low-rank reduction: xa = x @ a  (M x K x rank; trivially cheap,
    # done once instead of once per N tile inside the grid).  Kept in f32.
    xa = jnp.dot(x2d, a_eff, preferred_element_type=jnp.float32)

    # Tile sizes: cap at the maxima, never exceed the (padded) problem dims.
    tm = min(tm_max, _round_up(m, 8))
    tn = min(tn_max, _round_up(out_features, 128))
    tk = min(tk_max, _round_up(in_features, 128))
    m_pad = _round_up(m, tm)
    n_pad = _round_up(out_features, tn)
    k_pad = _round_up(in_features, tk)

    # Optional low-precision cast of the dominant streams only.
    if compute_dtype is not None:
        x2d = x2d.astype(compute_dtype)
        w = w.astype(compute_dtype)

    # Zero-pad to tile multiples (no-op/no-copy when already aligned, which is
    # the common case for transformer dims).  Padded K rows contribute 0 to
    # the reduction; padded M rows / N cols are sliced off below.
    xp = _pad2d(x2d, m_pad, k_pad)
    xap = _pad2d(xa, m_pad, rank)
    bp = _pad2d(b, rank, n_pad)
    wp = _pad2d(w, k_pad, n_pad)
    bias_row = (bias.reshape(1, -1).astype(jnp.float32)
                if bias is not None else jnp.zeros((1, out_features), jnp.float32))
    bias_p = _pad2d(bias_row, 1, n_pad)

    gm, gn, gk = m_pad // tm, n_pad // tn, k_pad // tk
    grid = (gm, gn, gk)

    def nbytes(arr):
        return arr.size * arr.dtype.itemsize

    flops = (2 * m_pad * k_pad * n_pad          # x @ w
             + 2 * m_pad * rank * n_pad)        # (x @ a) @ b  (xa is hoisted)
    bytes_accessed = (nbytes(xp) * gn           # x streamed once per j tile
                      + nbytes(wp) * gm         # w streamed once per i tile
                      + nbytes(xap) * gn
                      + nbytes(bp) * gm
                      + nbytes(bias_p) * gm
                      + m_pad * n_pad * jnp.dtype(out_dtype).itemsize)

    out = pl.pallas_call(
        _peft_linear_kernel,
        out_shape=jax.ShapeDtypeStruct((m_pad, n_pad), out_dtype),
        grid_spec=pltpu.PrefetchScalarGridSpec(
            num_scalar_prefetch=0,
            grid=grid,
            in_specs=[
                pl.BlockSpec((tm, tk), lambda i, j, k: (i, k)),      # x
                pl.BlockSpec((tm, rank), lambda i, j, k: (i, 0)),    # xa
                pl.BlockSpec((rank, tn), lambda i, j, k: (0, j)),    # b
                pl.BlockSpec((tk, tn), lambda i, j, k: (k, j)),      # w
                pl.BlockSpec((1, tn), lambda i, j, k: (0, j)),       # bias
            ],
            out_specs=pl.BlockSpec((tm, tn), lambda i, j, k: (i, j)),
            scratch_shapes=[
                pltpu.VMEM((tm, tn), jnp.float32),   # x @ w accumulator
            ],
        ),
        compiler_params=pltpu.CompilerParams(
            dimension_semantics=("parallel", "parallel", "arbitrary"),
            vmem_limit_bytes=vmem_limit_bytes,
        ),
        cost_estimate=pl.CostEstimate(
            flops=flops, transcendentals=0, bytes_accessed=int(bytes_accessed)),
    )(xp, xap, bp, wp, bias_p)

    out = out[:m, :out_features]
    # TODO(synk): merged=True fast path (x @ w only) and debug=True ab caching
    # are not wired; module default is merged=False/debug=False which is what
    # this kernel implements.
    return out.reshape(*lead_shape, out_features)


if __name__ == "__main__":
    key = jax.random.PRNGKey(0)

    # --- Test 1: module-consistent small shapes (single-tile grid). ---------
    batch, seq = 2, 8
    in_features, out_features, rank = 32, 32, 4
    kx, ka, kb, kw, kbias, k2 = jax.random.split(key, 6)

    x = jax.random.normal(kx, (batch, seq, in_features), dtype=jnp.float32)
    # NOTE: module default init_method='zero' would make a == 0; use a random
    # `a` so the adapter path is actually exercised.
    a = jax.random.normal(ka, (in_features, rank), dtype=jnp.float32) * 0.1
    b = jax.random.normal(kb, (rank, out_features), dtype=jnp.float32) * 0.1
    w = jax.random.normal(kw, (in_features, out_features), dtype=jnp.float32) * 0.1
    bias = jax.random.normal(kbias, (out_features,), dtype=jnp.float32) * 0.1

    y = jax.block_until_ready(peft_linear_forward(x, a, b, w))
    y_ref = x @ a @ b + x @ w
    assert y.shape == (batch, seq, out_features)
    assert jnp.allclose(y, y_ref, atol=1e-4, rtol=1e-4), "mismatch (test 1)"

    # Fused bias path.
    yb = jax.block_until_ready(peft_linear_forward(x, a, b, w, bias=bias))
    yb_ref = x @ a @ b + x @ w + bias.reshape(-1)
    assert jnp.allclose(yb, yb_ref, atol=1e-4, rtol=1e-4), "mismatch (bias)"

    # use_scale path: module scales `a` by alpha/rank.
    alpha = 32.0
    ys = jax.block_until_ready(
        peft_linear_forward(x, a, b, w, use_scale=True, alpha=alpha))
    ys_ref = x @ ((alpha / rank) * a) @ b + x @ w
    assert jnp.allclose(ys, ys_ref, atol=1e-4, rtol=1e-4), "mismatch (use_scale)"

    # --- Test 2: exercise the full (i, j, k) grid with small tile caps. -----
    b2, s2 = 2, 20
    inf2, outf2, rank2 = 320, 256, 8
    kx2, ka2, kb2, kw2 = jax.random.split(k2, 4)
    x2 = jax.random.normal(kx2, (b2, s2, inf2), dtype=jnp.float32)
    a2 = jax.random.normal(ka2, (inf2, rank2), dtype=jnp.float32) * 0.1
    b2_ = jax.random.normal(kb2, (rank2, outf2), dtype=jnp.float32) * 0.1
    w2 = jax.random.normal(kw2, (inf2, outf2), dtype=jnp.float32) * 0.1

    y2 = jax.block_until_ready(
        peft_linear_forward(x2, a2, b2_, w2, tm_max=16, tn_max=128, tk_max=128))
    y2_ref = x2 @ a2 @ b2_ + x2 @ w2
    assert y2.shape == (b2, s2, outf2)
    assert jnp.allclose(y2, y2_ref, atol=1e-4, rtol=1e-4), "mismatch (test 2)"

    # --- Test 3: bf16 compute path for the dominant x / w streams. ----------
    y3 = jax.block_until_ready(
        peft_linear_forward(x2, a2, b2_, w2, compute_dtype=jnp.bfloat16,
                            tm_max=16, tn_max=128, tk_max=128))
    assert y3.shape == (b2, s2, outf2)
    assert jnp.allclose(y3, y2_ref, atol=2e-1, rtol=2e-1), "mismatch (bf16)"

    print("KERNEL_OK")
</pallas_src>

<mosaic_0001>
module attributes {stable_mosaic.version = 11 : i64} {
  func.func @_peft_linear_kernel(%arg0: i32, %arg1: i32, %arg2: i32, %arg3: memref<16x128xf32, #tpu.memory_space<vmem>>, %arg4: memref<16x4xf32, #tpu.memory_space<vmem>>, %arg5: memref<4x128xf32, #tpu.memory_space<vmem>>, %arg6: memref<128x128xf32, #tpu.memory_space<vmem>>, %arg7: memref<1x128xf32, #tpu.memory_space<vmem>>, %arg8: memref<16x128xf32, #tpu.memory_space<vmem>>, %arg9: memref<16x128xf32, #tpu.memory_space<vmem>>) attributes {dimension_semantics = [#tpu.dimension_semantics<parallel>, #tpu.dimension_semantics<parallel>, #tpu.dimension_semantics<arbitrary>], iteration_bounds = array<i64: 1, 1, 1>, scalar_prefetch = 0 : i64, scratch_operands = 1 : i64, tpu.core_type = #tpu.core_type<tc>, window_params = [{transform_indices = @transform_0, window_bounds = array<i64: 16, 128>}, {transform_indices = @transform_1, window_bounds = array<i64: 16, 4>}, {transform_indices = @transform_2, window_bounds = array<i64: 4, 128>}, {transform_indices = @transform_3, window_bounds = array<i64: 128, 128>}, {transform_indices = @transform_4, window_bounds = array<i64: 1, 128>}, {transform_indices = @transform_5, window_bounds = array<i64: 16, 128>}]} {
    %c0_i32 = arith.constant 0 : i32
    %0 = arith.cmpi eq, %arg2, %c0_i32 : i32
    %1 = arith.extui %0 : i1 to i32
    %c0_i32_0 = arith.constant 0 : i32
    %2 = arith.cmpi ne, %1, %c0_i32_0 : i32
    scf.if %2 {
      %cst_10 = arith.constant 0.000000e+00 : f32
      %12 = vector.broadcast %cst_10 : f32 to vector<16x128xf32>
      %c0_11 = arith.constant 0 : index
      %c0_12 = arith.constant 0 : index
      %13 = vector.load %arg9[%c0_11, %c0_12] : memref<16x128xf32, #tpu.memory_space<vmem>>, vector<16x128xf32>
      tpu.vector_store %arg9[%c0_11, %c0_12], %12 {strides = array<i32>} : memref<16x128xf32, #tpu.memory_space<vmem>>, vector<16x128xf32>,
    } else {
    }
    %c0 = arith.constant 0 : index
    %c0_1 = arith.constant 0 : index
    %3 = vector.load %arg9[%c0, %c0_1] : memref<16x128xf32, #tpu.memory_space<vmem>>, vector<16x128xf32>
    %c0_2 = arith.constant 0 : index
    %c0_3 = arith.constant 0 : index
    %4 = vector.load %arg3[%c0_2, %c0_3] : memref<16x128xf32, #tpu.memory_space<vmem>>, vector<16x128xf32>
    %c0_4 = arith.constant 0 : index
    %c0_5 = arith.constant 0 : index
    %5 = vector.load %arg6[%c0_4, %c0_5] : memref<128x128xf32, #tpu.memory_space<vmem>>, vector<128x128xf32>
    %cst = arith.constant dense<0.000000e+00> : vector<16x128xf32>
    %6 = tpu.matmul %4, %5, %cst {dimension_numbers = #tpu.dot_dimension_numbers<[1], [0], [0], [1], [0, 0, 1, 1], [], []>} : vector<16x128xf32>, vector<128x128xf32>, vector<16x128xf32> -> vector<16x128xf32>
    %7 = arith.addf %3, %6 : vector<16x128xf32>
    %c0_6 = arith.constant 0 : index
    %c0_7 = arith.constant 0 : index
    %8 = vector.load %arg9[%c0_6, %c0_7] : memref<16x128xf32, #tpu.memory_space<vmem>>, vector<16x128xf32>
    tpu.vector_store %arg9[%c0_6, %c0_7], %7 {strides = array<i32>} : memref<16x128xf32, #tpu.memory_space<vmem>>, vector<16x128xf32>,
    %c0_i32_8 = arith.constant 0 : i32
    %9 = arith.cmpi eq, %arg2, %c0_i32_8 : i32
    %10 = arith.extui %9 : i1 to i32
    %c0_i32_9 = arith.constant 0 : i32
    %11 = arith.cmpi ne, %10, %c0_i32_9 : i32
    scf.if %11 {
      %c0_10 = arith.constant 0 : index
      %c0_11 = arith.constant 0 : index
      %12 = vector.load %arg4[%c0_10, %c0_11] : memref<16x4xf32, #tpu.memory_space<vmem>>, vector<16x4xf32>
      %c0_12 = arith.constant 0 : index
      %c0_13 = arith.constant 0 : index
      %13 = vector.load %arg5[%c0_12, %c0_13] : memref<4x128xf32, #tpu.memory_space<vmem>>, vector<4x128xf32>
      %cst_14 = arith.constant dense<0.000000e+00> : vector<16x128xf32>
      %14 = tpu.matmul %12, %13, %cst_14 {dimension_numbers = #tpu.dot_dimension_numbers<[1], [0], [0], [1], [0, 0, 1, 1], [], []>} : vector<16x4xf32>, vector<4x128xf32>, vector<16x128xf32> -> vector<16x128xf32>
      %c0_15 = arith.constant 0 : index
      %c0_16 = arith.constant 0 : index
      %15 = vector.load %arg9[%c0_15, %c0_16] : memref<16x128xf32, #tpu.memory_space<vmem>>, vector<16x128xf32>
      %16 = arith.addf %15, %14 : vector<16x128xf32>
      %c0_17 = arith.constant 0 : index
      %c0_18 = arith.constant 0 : index
      %17 = vector.load %arg7[%c0_17, %c0_18] : memref<1x128xf32, #tpu.memory_space<vmem>>, vector<1x128xf32>
      %18 = vector.broadcast %17 : vector<1x128xf32> to vector<16x128xf32>
      %19 = arith.addf %16, %18 : vector<16x128xf32>
      %c0_19 = arith.constant 0 : index
      %c0_20 = arith.constant 0 : index
      %20 = vector.load %arg8[%c0_19, %c0_20] : memref<16x128xf32, #tpu.memory_space<vmem>>, vector<16x128xf32>
      tpu.vector_store %arg8[%c0_19, %c0_20], %19 {strides = array<i32>} : memref<16x128xf32, #tpu.memory_space<vmem>>, vector<16x128xf32>,
    } else {
    }
    return
  }
  func.func @transform_0(%arg0: i32, %arg1: i32, %arg2: i32) -> (i32, i32) {
    %c0_i32 = arith.constant 0 : i32
    return %arg0, %arg2 : i32, i32
  }
  func.func @transform_1(%arg0: i32, %arg1: i32, %arg2: i32) -> (i32, i32) {
    %c0_i32 = arith.constant 0 : i32
    %c0_i32_0 = arith.constant 0 : i32
    return %arg0, %c0_i32 : i32, i32
  }
  func.func @transform_2(%arg0: i32, %arg1: i32, %arg2: i32) -> (i32, i32) {
    %c0_i32 = arith.constant 0 : i32
    %c0_i32_0 = arith.constant 0 : i32
    return %c0_i32, %arg1 : i32, i32
  }
  func.func @transform_3(%arg0: i32, %arg1: i32, %arg2: i32) -> (i32, i32) {
    %c0_i32 = arith.constant 0 : i32
    return %arg2, %arg1 : i32, i32
  }
  func.func @transform_4(%arg0: i32, %arg1: i32, %arg2: i32) -> (i32, i32) {
    %c0_i32 = arith.constant 0 : i32
    %c0_i32_0 = arith.constant 0 : i32
    return %c0_i32, %arg1 : i32, i32
  }
  func.func @transform_5(%arg0: i32, %arg1: i32, %arg2: i32) -> (i32, i32) {
    %c0_i32 = arith.constant 0 : i32
    return %arg0, %arg1 : i32, i32
  }
}

</mosaic_0001>

<bundles_post_ra>
// kernel: tpu_custom_call.1
= control target key start
LH: loop header
LB: loop body
LE: loop exit
PB: predicated region body
PF: predicated region fallthrough
CT: control target
= control target key end

     0   :  { %10 = vsyncpa [#allocation4], 0  ;;  %s497_s0 = inlined_call_operand.vmem [shape: f32[16,128], index: 0, kind: input, shape index: {}]   ;;  %s498_s1 = inlined_call_operand.vmem [shape: f32[16,4], index: 1, kind: input, shape index: {}]   ;;  %s499_s2 = inlined_call_operand.vmem [shape: f32[4,128], index: 2, kind: input, shape index: {}]   ;;  %s500_s3 = inlined_call_operand.hbm [shape: f32[128,128], index: 3, kind: input, shape index: {}]   ;;  %s501_s4 = inlined_call_operand.vmem [shape: f32[1,128], index: 4, kind: input, shape index: {}]   ;;  %s502_s5 = inlined_call_operand.hbm [shape: f32[16,128], index: 5, kind: output, shape index: {}]  }
   0x1   :  { %11 = vsyncpa [#allocation5], 0  ;;  %s415_s18 = smov [#allocation3]   ;;  %s367_s22 = scalar_lea.hbm %s500_s3, 2048 }
   0x2   :  { %s23_s19 = sshll.u32 %s415_s18, 4  ;;  %p368_p0 = scmp.ne.s32.totalorder %s500_s3, %s367_s22  ;;  %s24_s19 = int_to_ptr.vmem [resolvable:$true] %s23_s19 }
   0x3   :  { %p371_p1 = scmp.lt.u32.totalorder %s367_s22, %s500_s3 }
   0x5   :  { %p373_p2 = pnand %p371_p1, %p368_p0 }
   0x7   :  { %376 = shalt.err (!%p373_p2)
}
   0x8   :  { %s377_s27 = scalar_lea.vmem %s24_s19, 2048  ;;  %p382_p4 = scmp.lt.s32.totalorder %s24_s19, %s24_s19 }
   0x9   :  { %p378_p3 = scmp.ne.s32.totalorder %s24_s19, %s377_s27  ;;  %p383_p5 = scmp.lt.s32.totalorder %s377_s27, %s377_s27 }
   0xb   :  { %p384_p6 = por %p383_p5, %p382_p4 }
   0xd   :  { %p385_p7 = pnand %p384_p6, %p378_p3 }
   0xf   :  { %388 = shalt.err (!%p385_p7)
}
  0x10   :  { %s416_s28 = smov 128   ;;  %s417_s29 = smov 8  }
  0x11   :  { %29 = dma.hbm_to_vmem [thread:$0]  %s500_s3, 2048, %s24_s19, [#allocation4], %s416_s28, %s416_s28, %s417_s29  }
  0x12   :  { %411 = dma.done.wait [#allocation4], 2048  }
  0x13   :  { %412 = vsyncadd [#allocation4], 4294965248  ;;  %v45_v0 = vld [vmem:[#allocation3] sm:$0xff]  ;;  %v46_v1 = vld [vmem:[#allocation3 + $0x8] sm:$0xff]  ;;  %vm153_vm0 = vcmask 1043456   ;;  %vm146_vm1 = vcmask 31744  }
  0x14   :  { %v47_v2 = vld [vmem:[#allocation3 + $0x10] sm:$0xff]  ;;  %v329_v3 = vpack.c.bf16 %v46_v1, %v45_v0  ;;  %v48_v4 = vld [vmem:[#allocation3 + $0x18] sm:$0xff]  ;;  %v49_v6 = vld [vmem:[#allocation3 + $0x20] sm:$0xff]  ;;  %s418_s16 = smov [#allocation6]  }
  0x15   :  { %v333_v5 = vpack.c.bf16 %v48_v4, %v47_v2  ;;  %v50_v7 = vld [vmem:[#allocation3 + $0x28] sm:$0xff]  ;;  %v51_v9 = vld [vmem:[#allocation3 + $0x30] sm:$0xff]  ;;  %v145_v10 = vld [vmem:[%s499_s2] sm:$0xf]  ;;  %s252_s17 = sshll.u32 %s418_s16, 4  ;;  %s253_s17 = int_to_ptr.vmem [resolvable:$true] %s252_s17 }
  0x16   :  { %330 = vmatprep.subr.bf16.mxu1 %v329_v3  ;;  %v337_v8 = vpack.c.bf16 %v50_v7, %v49_v6  ;;  %v143_v11 = vld [vmem:[%s498_s1] sm:$0xff]  ;;  %v52_v12 = vld [vmem:[#allocation3 + $0x38] sm:$0xff]  ;;  %324 = vmatprep.subr.msk.mxu0 %vm153_vm0, %v145_v10  ;;  %v144_v14 = vld [vmem:[%s498_s1 + $0x8] sm:$0xff]  ;;  %s389_s18 = scalar_lea.vmem %s253_s17, 256  ;;  %p394_p9 = scmp.lt.s32.totalorder %s253_s17, %s253_s17 }
  0x17   :  { %332 = vmatpush3.bf16.msra.mxu1 %v329_v3  ;;  %326 = vmatprep.mubr.msk.f32.mxu0 %vm146_vm1, %v143_v11  ;;  %v43_v13 = vld [vmem:[%s497_s0] sm:$0xff]  ;;  %v341_v15 = vpack.c.bf16 %v52_v12, %v51_v9  ;;  %v54_v17 = vld [vmem:[#allocation3 + $0x48] sm:$0xff]  ;;  %v55_v19 = vld [vmem:[#allocation3 + $0x50] sm:$0xff]  ;;  %p390_p8 = scmp.ne.s32.totalorder %s253_s17, %s389_s18  ;;  %p395_p10 = scmp.lt.s32.totalorder %s389_s18, %s389_s18 }
  0x18   :  { %334 = vmatprep.subr.bf16.mxu1 %v333_v5  ;;  %325 = vmatpush3.msk.msra.mxu0 %vm153_vm0, %v145_v10  ;;  %v53_v16 = vld [vmem:[#allocation3 + $0x40] sm:$0xff]  ;;  %v56_v20 = vld [vmem:[#allocation3 + $0x58] sm:$0xff]  ;;  %v58_v23 = vld [vmem:[#allocation3 + $0x68] sm:$0xff] }
  0x19   :  { %321 = vmatprep.mubr.f32.mxu1 %v43_v13  ;;  %327 = vmatmul.mubr.msk.f32.vlgmr.msra.gmra.mrb[0].mxu0 %vm146_vm1, %v144_v14  ;;  %v345_v18 = vpack.c.bf16 %v54_v17, %v53_v16  ;;  %v349_v21 = vpack.c.bf16 %v56_v20, %v55_v19  ;;  %v57_v22 = vld [vmem:[#allocation3 + $0x60] sm:$0xff]  ;;  %v59_v25 = vld [vmem:[#allocation3 + $0x70] sm:$0xff]  ;;  %v60_v26 = vld [vmem:[#allocation3 + $0x78] sm:$0xff]  ;;  %p396_p11 = por %p395_p10, %p394_p9 }
  0x1a   :  { %v353_v24 = vpack.c.bf16 %v58_v23, %v57_v22  ;;  %v357_v27 = vpack.c.bf16 %v60_v26, %v59_v25  ;;  %v44_v28 = vld [vmem:[%s497_s0 + $0x8] sm:$0xff]  ;;  %v267_v32 = vld [vmem:[%s501_s4] ss:$0 sm:$0xff] }
  0x1b   :  { %336 = vmatpush3.bf16.msra.mxu1 %v333_v5  ;;  %p397_p12 = pnand %p396_p11, %p390_p8 }
  0x1c   :  { %338 = vmatprep.subr.bf16.mxu1 %v337_v8 }
  0x1f   :  { %340 = vmatpush3.bf16.msra.mxu1 %v337_v8 }
  0x20   :  { %342 = vmatprep.subr.bf16.mxu1 %v341_v15 }
  0x23   :  { %344 = vmatpush3.bf16.msra.mxu1 %v341_v15 }
  0x24   :  { %346 = vmatprep.subr.bf16.mxu1 %v345_v18 }
  0x27   :  { %348 = vmatpush3.bf16.msra.mxu1 %v345_v18 }
  0x28   :  { %350 = vmatprep.subr.bf16.mxu1 %v349_v21 }
  0x2b   :  { %352 = vmatpush3.bf16.msra.mxu1 %v349_v21 }
  0x2c   :  { %354 = vmatprep.subr.bf16.mxu1 %v353_v24 }
  0x2f   :  { %356 = vmatpush3.bf16.msra.mxu1 %v353_v24 }
  0x30   :  { %358 = vmatprep.subr.bf16.mxu1 %v357_v27 }
  0x33   :  { %360 = vmatpush3.bf16.msra.mxu1 %v357_v27 }
  0x36   :  { %322 = vmatmul.mubr.f32.vlgmr.msra.gmra.mrb[0].mxu1 %v44_v28 }
  0xec   :  { %v328_v29 = vpop.f32.mrb[0].mxu0 }
  0xed   :  { %v223_v30 = vpop.f32.mrb[1].mxu0 }
 0x109   :  { %v323_v31 = vpop.f32.mrb[0].mxu1 }
 0x10a   :  { %v235_v33 = vadd.f32 %v328_v29, %v323_v31  ;;  %v127_v34 = vpop.f32.mrb[1].mxu1 }
 0x10b   :  { %v234_v35 = vadd.f32 %v223_v30, %v127_v34 }
 0x10c   :  { %v244_v36 = vadd.f32 %v267_v32, %v235_v33 }
 0x10d   :  { %v243_v37 = vadd.f32 %v267_v32, %v234_v35 }
 0x10e   :  { %246 = vst [vmem:[#allocation6 + $0x8] sm:$0xff] %v244_v36 }
 0x10f   :  { %245 = vst [vmem:[#allocation6] sm:$0xff] %v243_v37 }
 0x110   :  { %400 = shalt.err (!%p397_p12)
}
 0x111   :  { %s401_s4 = scalar_lea.hbm %s502_s5, 256 }
 0x112   :  { %p402_p13 = scmp.ne.s32.totalorder %s502_s5, %s401_s4  ;;  %p405_p0 = scmp.lt.u32.totalorder %s401_s4, %s502_s5 }
 0x114   :  { %p407_p1 = pnand %p405_p0, %p402_p13 }
 0x116   :  { %410 = shalt.err (!%p407_p1)
}
 0x117   :  { %258 = dma.vmem_to_hbm [thread:$0]  %s253_s17, 256, %s502_s5, [#allocation5], %s416_s28, %s416_s28, %s417_s29  }
 0x118   :  { %413 = dma.done.wait [#allocation5], 256  }
 0x119   :  { %414 = vsyncadd [#allocation5], 4294967040 }
 0x11a   :  { %262 = vsyncpa [#allocation4], 1 }
 0x11b   :  { %263 = vsyncpa [#allocation5], 1 }

</bundles_post_ra>
